<compile_context>
chip_gen: v7x
topology: tpu7x:2x2x1
jax: 0.10.0
libtpu: 0.0.40
codegen_flags: <defaults>
</compile_context>

<pallas_src>
import math
from functools import partial

import jax
import jax.numpy as jnp
from jax.experimental import pallas as pl
from jax.experimental.pallas import tpu as pltpu


# -----------------------------------------------------------------------------
# One-time, x-independent parameter preparation (plain JAX, run once per
# weight set).  Pure function of the module parameters.
# -----------------------------------------------------------------------------
def prepare_dgcnn_params(A, W_cheby, bn_gamma, bn_beta, fc_w, fc_b,
                         weight_dtype=jnp.bfloat16):
    E = A.shape[0]
    K, C, O = W_cheby.shape
    num_classes = fc_w.shape[0]
    # Reference-model requirement (BatchNorm1d(in_channels) applied to dim 1).
    assert E == C, "DGCNN reference semantics require num_electrodes == in_channels"

    f32 = jnp.float32
    eye = jnp.eye(E, dtype=f32)

    # ---- normalize_A (lmax = 2), exactly as the reference ----
    Ar = jnp.maximum(A.astype(f32), 0.0)
    Ar = Ar * (1.0 - eye)              # zero diagonal
    Ar = Ar + Ar.T                     # symmetrize
    d = 1.0 / jnp.sqrt(jnp.sum(Ar, axis=1) + 1e-10)
    L = eye - (d[:, None] * Ar) * d[None, :]
    Ln = 2.0 * L / 2.0 - eye

    # ---- Chebyshev supports: T0 = I, T1 = Ln, Tk = 2 Ln T_{k-1} - T_{k-2} ----
    supports = [eye]
    if K > 1:
        supports.append(Ln)
    for _ in range(2, K):
        supports.append(2.0 * jnp.matmul(Ln, supports[-1]) - supports[-2])

    # ---- Fold the whole K-order graph conv into one operator ----
    #   feat[b, e*O + o] = sum_{f,c} xbn[b, f*C + c] * M[f*C + c, e*O + o]
    #   with  M[(f,c),(e,o)] = sum_k T_k[e,f] * W_k[c,o] = sum_k kron(T_k^T, W_k)
    M_raw = jnp.zeros((E * C, E * O), f32)
    for k in range(K):
        M_raw = M_raw + jnp.kron(supports[k].T, W_cheby[k].astype(f32))

    # ---- Fold BN affine (gamma, beta) into M / bias ----
    #   xbn = xhat * gamma_row + beta_row   (per-electrode gamma/beta, lane-rep)
    #   xbn @ M_raw = xhat @ (diag(gamma_row) M_raw) + beta_row @ M_raw
    gamma_row = jnp.repeat(bn_gamma.astype(f32), C)                  # (E*C,)
    beta_row = jnp.repeat(bn_beta.astype(f32), C).reshape(1, E * C)  # (1, E*C)
    M = (gamma_row[:, None] * M_raw).astype(weight_dtype)            # (E*C, E*O)
    bias = jnp.matmul(beta_row, M_raw).astype(f32)                   # (1, E*O)

    fcw_t = jnp.asarray(fc_w, f32).T                      # (E*O, num_classes)
    fcb = jnp.asarray(fc_b, f32).reshape(1, num_classes)

    return M, bias, fcw_t, fcb


# -----------------------------------------------------------------------------
# Fused kernel: BN (training-mode batch stats) + graph conv + ReLU + FC.
# One grid step == one independent forward of the module.
# -----------------------------------------------------------------------------
def dgcnn_fused_kernel(x_ref, m_ref, bias_ref, fcw_ref, fcb_ref, out_ref, *, group):
    f32 = jnp.float32
    x = x_ref[...]                                   # (B, E*C) f32
    bsz, ec = x.shape
    n_e = ec // group
    inv_b = 1.0 / bsz

    # ---- BatchNorm1d batch stats, single pass: stack [sum(x); sum(x^2)] ----
    s1 = jnp.sum(x, axis=0, keepdims=True)           # (1, E*C)
    s2 = jnp.sum(x * x, axis=0, keepdims=True)       # (1, E*C)
    s12 = jnp.concatenate([s1, s2], axis=0)          # (2, E*C)

    # In-register group-of-C pooling operator (replaces the 256 KiB P matrix):
    #   pool[f*C+c, e] = 1/C if f == e else 0
    rr = jax.lax.broadcasted_iota(jnp.int32, (ec, n_e), 0)
    rc = jax.lax.broadcasted_iota(jnp.int32, (ec, n_e), 1)
    dr = rr - rc * group
    pool = jnp.where((dr >= 0) & (dr < group), 1.0 / group, 0.0).astype(f32)

    stats = jnp.dot(s12, pool, preferred_element_type=f32) * inv_b   # (2, E): [E[x]; E[x^2]]
    mean_e = stats[0:1, :]
    var_e = stats[1:2, :] - mean_e * mean_e          # biased var over (B, C)
    inv_std_e = jax.lax.rsqrt(var_e + 1e-5)
    mi = jnp.concatenate([mean_e, inv_std_e], axis=0)                # (2, E)

    # In-register lane-broadcast operator: bcast[e, f*C+c] = (e == f)
    br = jax.lax.broadcasted_iota(jnp.int32, (n_e, ec), 0)
    bc = jax.lax.broadcasted_iota(jnp.int32, (n_e, ec), 1)
    db = bc - br * group
    bcast = jnp.where((db >= 0) & (db < group), 1.0, 0.0).astype(f32)

    mb = jnp.dot(mi, bcast, preferred_element_type=f32)              # (2, E*C)
    # gamma/beta are folded into m_ref/bias_ref at prep time.
    xhat = (x - mb[0:1, :]) * mb[1:2, :]                             # f32 elementwise

    # ---- Chebyshev graph conv (all K orders pre-folded into m_ref) + ReLU ----
    # bf16 operands, f32 accumulation; lane-dense (B, E*O) stays in vregs.
    feat = jnp.maximum(
        jnp.dot(xhat.astype(m_ref.dtype), m_ref[...],
                preferred_element_type=f32) + bias_ref[...],
        0.0)

    # ---- Final fully-connected layer (f32 weights, 16 KiB) ----
    out_ref[...] = (
        jnp.dot(feat, fcw_ref[...], preferred_element_type=f32) + fcb_ref[...]
    ).astype(out_ref.dtype)


# -----------------------------------------------------------------------------
# Hot-path forward.  xs is (N, B, E, C): N independent forwards fused in one
# pallas_call; weights are DMAed once (constant index_maps) and stay resident.
# -----------------------------------------------------------------------------
@jax.jit
def dgcnn_forward_many(xs, M, bias, fcw_t, fcb):
    N, B, E, C = xs.shape
    ec = E * C
    num_classes = fcw_t.shape[1]
    x_flat = xs.reshape(N, B, ec)         # contiguous flatten -> free under jit

    kernel = partial(dgcnn_fused_kernel, group=C)
    const2 = lambda n: (0, 0)

    return pl.pallas_call(
        kernel,
        out_shape=jax.ShapeDtypeStruct((N, B, num_classes), jnp.float32),
        grid=(N,),
        in_specs=[
            pl.BlockSpec((None, B, ec), lambda n: (n, 0, 0)),     # x: one forward per step
            pl.BlockSpec(M.shape, const2),                        # weights: fetched once,
            pl.BlockSpec(bias.shape, const2),                     #   VMEM-resident across
            pl.BlockSpec(fcw_t.shape, const2),                    #   all grid steps
            pl.BlockSpec(fcb.shape, const2),
        ],
        out_specs=pl.BlockSpec((None, B, num_classes), lambda n: (n, 0, 0)),
        compiler_params=pltpu.CompilerParams(
            dimension_semantics=("parallel",)),   # v7x: split steps across both TCs
    )(x_flat, M, bias, fcw_t, fcb)


@jax.jit
def dgcnn_forward(x, M, bias, fcw_t, fcb):
    """Single forward (one module call): N == 1 grid."""
    return dgcnn_forward_many(x[None], M, bias, fcw_t, fcb)[0]


# -----------------------------------------------------------------------------
# Pure-JAX reference (mirrors the PyTorch forward) for a sanity check
# -----------------------------------------------------------------------------
def reference_forward(x, A, W, bn_gamma, bn_beta, fc_w, fc_b):
    hp = jax.lax.Precision.HIGHEST
    B, E, C = x.shape
    K = W.shape[0]
    mean = x.mean(axis=(0, 2), keepdims=True)
    var = ((x - mean) ** 2).mean(axis=(0, 2), keepdims=True)
    xbn = (x - mean) / jnp.sqrt(var + 1e-5) * bn_gamma[None, :, None] + bn_beta[None, :, None]

    A = jnp.maximum(A, 0.0)
    A = A * (1.0 - jnp.eye(E, dtype=A.dtype))
    A = A + A.T
    d = 1.0 / jnp.sqrt(A.sum(1) + 1e-10)
    L = jnp.eye(E, dtype=A.dtype) - (d[:, None] * A) * d[None, :]
    Ln = 2.0 * L / 2.0 - jnp.eye(E, dtype=A.dtype)

    sup = [jnp.eye(E, dtype=A.dtype)]
    if K > 1:
        sup.append(Ln)
    for _ in range(2, K):
        sup.append(jnp.matmul(2.0 * Ln, sup[-1], precision=hp) - sup[-2])

    res = jnp.zeros((B, E, W.shape[2]), jnp.float32)
    for k in range(K):
        tx = jnp.einsum('ef,bfc->bec', sup[k], xbn, precision=hp)
        res = res + jnp.einsum('bec,co->beo', tx, W[k], precision=hp)
    res = jnp.maximum(res, 0.0)
    flat = res.reshape(B, -1)
    return jnp.matmul(flat, fc_w.T, precision=hp) + fc_b[None, :]


# -----------------------------------------------------------------------------
# Main
# -----------------------------------------------------------------------------
if __name__ == "__main__":
    # Small shapes consistent with the module.  num_electrodes == in_channels
    # is required by the reference code's direct BatchNorm1d(in_channels)(x).
    B = 4
    num_electrodes = 16
    in_channels = 16           # must equal num_electrodes (see layout note)
    out_channels = 32
    K = 4                      # k_adj
    num_classes = 8            # args['num_classes']
    N_CALLS = 4                # independent forwards fused into one launch

    key = jax.random.PRNGKey(0)
    k_x, k_xs, k_A, k_W, k_fc, k_g, k_b = jax.random.split(key, 7)

    x = jax.random.normal(k_x, (B, num_electrodes, in_channels), jnp.float32)
    xs = jax.random.normal(k_xs, (N_CALLS, B, num_electrodes, in_channels), jnp.float32)

    # nn.init.uniform_(A, 0.01, 0.5)
    A = jax.random.uniform(k_A, (num_electrodes, num_electrodes), jnp.float32,
                           minval=0.01, maxval=0.5)

    # K GraphConvolution weights, xavier_normal_ on (in_channels, out_channels)
    std_gc = math.sqrt(2.0 / (in_channels + out_channels))
    W_cheby = std_gc * jax.random.normal(k_W, (K, in_channels, out_channels), jnp.float32)

    # fc: nn.Linear(num_electrodes*out_channels, num_classes), xavier_normal_, zero bias
    fan_in = num_electrodes * out_channels
    std_fc = math.sqrt(2.0 / (fan_in + num_classes))
    fc_w = std_fc * jax.random.normal(k_fc, (num_classes, fan_in), jnp.float32)
    fc_b = jnp.zeros((num_classes,), jnp.float32)

    # Non-trivial BN affine params (valid learned state of the module) so the
    # gamma/beta -> (M, bias) folding is actually exercised by the test.
    bn_gamma = 1.0 + 0.1 * jax.random.normal(k_g, (num_electrodes,), jnp.float32)
    bn_beta = 0.1 * jax.random.normal(k_b, (num_electrodes,), jnp.float32)

    # One-time (x-independent) prep, then the fused single-kernel forward.
    M, bias, fcw_t, fcb = prepare_dgcnn_params(
        A, W_cheby, bn_gamma, bn_beta, fc_w, fc_b)

    # --- single forward (grid of 1) ---
    out = jax.block_until_ready(dgcnn_forward(x, M, bias, fcw_t, fcb))
    ref = jax.block_until_ready(
        reference_forward(x, A, W_cheby, bn_gamma, bn_beta, fc_w, fc_b))
    assert out.shape == (B, num_classes), out.shape
    # Tolerance sized for bf16 graph-conv weights with f32 accumulation.
    err = float(jnp.max(jnp.abs(out - ref)))
    assert err < 5e-2, f"single-forward mismatch vs reference, max_err={err}"

    # --- N independent forwards fused into one launch (weights DMAed once) ---
    outs = jax.block_until_ready(dgcnn_forward_many(xs, M, bias, fcw_t, fcb))
    assert outs.shape == (N_CALLS, B, num_classes), outs.shape
    for n in range(N_CALLS):
        refn = reference_forward(xs[n], A, W_cheby, bn_gamma, bn_beta, fc_w, fc_b)
        errn = float(jnp.max(jnp.abs(outs[n] - refn)))
        assert errn < 5e-2, f"batched-forward chunk {n} mismatch, max_err={errn}"

    print("KERNEL_OK")
</pallas_src>

<mosaic_0001>
module attributes {stable_mosaic.version = 11 : i64} {
  func.func @dgcnn_fused_kernel(%arg0: i32, %arg1: memref<1x4x256xf32, #tpu.memory_space<vmem>>, %arg2: memref<256x512xbf16, #tpu.memory_space<vmem>>, %arg3: memref<1x512xf32, #tpu.memory_space<vmem>>, %arg4: memref<512x8xf32, #tpu.memory_space<vmem>>, %arg5: memref<1x8xf32, #tpu.memory_space<vmem>>, %arg6: memref<1x4x8xf32, #tpu.memory_space<vmem>>) attributes {dimension_semantics = [#tpu.dimension_semantics<parallel>], iteration_bounds = array<i64: 1>, scalar_prefetch = 0 : i64, scratch_operands = 0 : i64, tpu.core_type = #tpu.core_type<tc>, window_params = [{transform_indices = @transform_0, window_bounds = array<i64: 1, 4, 256>}, {pipeline_mode = #tpu.pipeline_mode<synchronous>, transform_indices = @transform_1, window_bounds = array<i64: 256, 512>}, {pipeline_mode = #tpu.pipeline_mode<synchronous>, transform_indices = @transform_2, window_bounds = array<i64: 1, 512>}, {pipeline_mode = #tpu.pipeline_mode<synchronous>, transform_indices = @transform_3, window_bounds = array<i64: 512, 8>}, {pipeline_mode = #tpu.pipeline_mode<synchronous>, transform_indices = @transform_4, window_bounds = array<i64: 1, 8>}, {transform_indices = @transform_5, window_bounds = array<i64: 1, 4, 8>}]} {
    %c0 = arith.constant 0 : index
    %c0_0 = arith.constant 0 : index
    %c0_1 = arith.constant 0 : index
    %0 = vector.load %arg1[%c0, %c0_0, %c0_1] : memref<1x4x256xf32, #tpu.memory_space<vmem>>, vector<1x4x256xf32>
    %1 = vector.shape_cast %0 : vector<1x4x256xf32> to vector<4x256xf32>
    %cst = arith.constant dense<0.000000e+00> : vector<256xf32>
    %2 = vector.multi_reduction <add>, %1, %cst [0] : vector<4x256xf32> to vector<256xf32>
    %3 = vector.shape_cast %2 : vector<256xf32> to vector<1x256xf32>
    %4 = arith.mulf %1, %1 : vector<4x256xf32>
    %cst_2 = arith.constant dense<0.000000e+00> : vector<256xf32>
    %5 = vector.multi_reduction <add>, %4, %cst_2 [0] : vector<4x256xf32> to vector<256xf32>
    %6 = vector.shape_cast %5 : vector<256xf32> to vector<1x256xf32>
    %7 = tpu.concatenate %3, %6 in 0 : vector<1x256xf32>, vector<1x256xf32> -> vector<2x256xf32>
    %8 = tpu.iota {dimensions = array<i32: 0>} : vector<256x16xi32>
    %9 = tpu.iota {dimensions = array<i32: 1>} : vector<256x16xi32>
    %c16_i32 = arith.constant 16 : i32
    %10 = vector.broadcast %c16_i32 : i32 to vector<256x16xi32>
    %11 = arith.muli %9, %10 : vector<256x16xi32>
    %12 = arith.subi %8, %11 : vector<256x16xi32>
    %c0_i32 = arith.constant 0 : i32
    %13 = vector.broadcast %c0_i32 : i32 to vector<256x16xi32>
    %14 = arith.cmpi sge, %12, %13 : vector<256x16xi32>
    %c16_i32_3 = arith.constant 16 : i32
    %15 = vector.broadcast %c16_i32_3 : i32 to vector<256x16xi32>
    %16 = arith.cmpi slt, %12, %15 : vector<256x16xi32>
    %17 = arith.andi %14, %16 : vector<256x16xi1>
    %cst_4 = arith.constant 6.250000e-02 : f32
    %cst_5 = arith.constant 0.000000e+00 : f32
    %18 = vector.broadcast %cst_4 : f32 to vector<256x16xf32>
    %19 = vector.broadcast %cst_5 : f32 to vector<256x16xf32>
    %20 = arith.select %17, %18, %19 : vector<256x16xi1>, vector<256x16xf32>
    %cst_6 = arith.constant dense<0.000000e+00> : vector<2x16xf32>
    %21 = tpu.matmul %7, %20, %cst_6 {dimension_numbers = #tpu.dot_dimension_numbers<[1], [0], [0], [1], [0, 0, 1, 1], [], []>} : vector<2x256xf32>, vector<256x16xf32>, vector<2x16xf32> -> vector<2x16xf32>
    %cst_7 = arith.constant 2.500000e-01 : f32
    %22 = vector.broadcast %cst_7 : f32 to vector<2x16xf32>
    %23 = arith.mulf %21, %22 : vector<2x16xf32>
    %24 = vector.extract_strided_slice %23 {offsets = [0, 0], sizes = [1, 16], strides = [1, 1]} : vector<2x16xf32> to vector<1x16xf32>
    %25 = vector.extract_strided_slice %23 {offsets = [1, 0], sizes = [1, 16], strides = [1, 1]} : vector<2x16xf32> to vector<1x16xf32>
    %26 = arith.mulf %24, %24 : vector<1x16xf32>
    %27 = arith.subf %25, %26 : vector<1x16xf32>
    %cst_8 = arith.constant 9.99999974E-6 : f32
    %28 = vector.broadcast %cst_8 : f32 to vector<1x16xf32>
    %29 = arith.addf %27, %28 : vector<1x16xf32>
    %30 = math.rsqrt %29 : vector<1x16xf32>
    %31 = tpu.concatenate %24, %30 in 0 : vector<1x16xf32>, vector<1x16xf32> -> vector<2x16xf32>
    %32 = tpu.iota {dimensions = array<i32: 0>} : vector<16x256xi32>
    %33 = tpu.iota {dimensions = array<i32: 1>} : vector<16x256xi32>
    %c16_i32_9 = arith.constant 16 : i32
    %34 = vector.broadcast %c16_i32_9 : i32 to vector<16x256xi32>
    %35 = arith.muli %32, %34 : vector<16x256xi32>
    %36 = arith.subi %33, %35 : vector<16x256xi32>
    %c0_i32_10 = arith.constant 0 : i32
    %37 = vector.broadcast %c0_i32_10 : i32 to vector<16x256xi32>
    %38 = arith.cmpi sge, %36, %37 : vector<16x256xi32>
    %c16_i32_11 = arith.constant 16 : i32
    %39 = vector.broadcast %c16_i32_11 : i32 to vector<16x256xi32>
    %40 = arith.cmpi slt, %36, %39 : vector<16x256xi32>
    %41 = arith.andi %38, %40 : vector<16x256xi1>
    %cst_12 = arith.constant 1.000000e+00 : f32
    %cst_13 = arith.constant 0.000000e+00 : f32
    %42 = vector.broadcast %cst_12 : f32 to vector<16x256xf32>
    %43 = vector.broadcast %cst_13 : f32 to vector<16x256xf32>
    %44 = arith.select %41, %42, %43 : vector<16x256xi1>, vector<16x256xf32>
    %cst_14 = arith.constant dense<0.000000e+00> : vector<2x256xf32>
    %45 = tpu.matmul %31, %44, %cst_14 {dimension_numbers = #tpu.dot_dimension_numbers<[1], [0], [0], [1], [0, 0, 1, 1], [], []>} : vector<2x16xf32>, vector<16x256xf32>, vector<2x256xf32> -> vector<2x256xf32>
    %46 = vector.extract_strided_slice %45 {offsets = [0, 0], sizes = [1, 256], strides = [1, 1]} : vector<2x256xf32> to vector<1x256xf32>
    %47 = vector.broadcast %46 : vector<1x256xf32> to vector<4x256xf32>
    %48 = arith.subf %1, %47 : vector<4x256xf32>
    %49 = vector.extract_strided_slice %45 {offsets = [1, 0], sizes = [1, 256], strides = [1, 1]} : vector<2x256xf32> to vector<1x256xf32>
    %50 = vector.broadcast %49 : vector<1x256xf32> to vector<4x256xf32>
    %51 = arith.mulf %48, %50 : vector<4x256xf32>
    %52 = arith.truncf %51 : vector<4x256xf32> to vector<4x256xbf16>
    %c0_15 = arith.constant 0 : index
    %c0_16 = arith.constant 0 : index
    %53 = vector.load %arg2[%c0_15, %c0_16] : memref<256x512xbf16, #tpu.memory_space<vmem>>, vector<256x512xbf16>
    %cst_17 = arith.constant dense<0.000000e+00> : vector<4x512xf32>
    %54 = tpu.matmul %52, %53, %cst_17 {dimension_numbers = #tpu.dot_dimension_numbers<[1], [0], [0], [1], [0, 0, 1, 1], [], []>} : vector<4x256xbf16>, vector<256x512xbf16>, vector<4x512xf32> -> vector<4x512xf32>
    %c0_18 = arith.constant 0 : index
    %c0_19 = arith.constant 0 : index
    %55 = vector.load %arg3[%c0_18, %c0_19] : memref<1x512xf32, #tpu.memory_space<vmem>>, vector<1x512xf32>
    %56 = vector.broadcast %55 : vector<1x512xf32> to vector<4x512xf32>
    %57 = arith.addf %54, %56 : vector<4x512xf32>
    %cst_20 = arith.constant 0.000000e+00 : f32
    %58 = vector.broadcast %cst_20 : f32 to vector<4x512xf32>
    %59 = arith.maximumf %57, %58 : vector<4x512xf32>
    %c0_21 = arith.constant 0 : index
    %c0_22 = arith.constant 0 : index
    %60 = vector.load %arg4[%c0_21, %c0_22] : memref<512x8xf32, #tpu.memory_space<vmem>>, vector<512x8xf32>
    %cst_23 = arith.constant dense<0.000000e+00> : vector<4x8xf32>
    %61 = tpu.matmul %59, %60, %cst_23 {dimension_numbers = #tpu.dot_dimension_numbers<[1], [0], [0], [1], [0, 0, 1, 1], [], []>} : vector<4x512xf32>, vector<512x8xf32>, vector<4x8xf32> -> vector<4x8xf32>
    %c0_24 = arith.constant 0 : index
    %c0_25 = arith.constant 0 : index
    %62 = vector.load %arg5[%c0_24, %c0_25] : memref<1x8xf32, #tpu.memory_space<vmem>>, vector<1x8xf32>
    %63 = vector.broadcast %62 : vector<1x8xf32> to vector<4x8xf32>
    %64 = arith.addf %61, %63 : vector<4x8xf32>
    %c0_26 = arith.constant 0 : index
    %c0_27 = arith.constant 0 : index
    %c0_28 = arith.constant 0 : index
    %65 = vector.load %arg6[%c0_26, %c0_27, %c0_28] : memref<1x4x8xf32, #tpu.memory_space<vmem>>, vector<1x4x8xf32>
    %66 = vector.shape_cast %65 : vector<1x4x8xf32> to vector<4x8xf32>
    %67 = vector.shape_cast %64 : vector<4x8xf32> to vector<1x4x8xf32>
    tpu.vector_store %arg6[%c0_26, %c0_27, %c0_28], %67 {strides = array<i32>} : memref<1x4x8xf32, #tpu.memory_space<vmem>>, vector<1x4x8xf32>,
    return
  }
  func.func @transform_0(%arg0: i32) -> (i32, i32, i32) {
    %c0_i32 = arith.constant 0 : i32
    %c0_i32_0 = arith.constant 0 : i32
    %c0_i32_1 = arith.constant 0 : i32
    return %arg0, %c0_i32, %c0_i32_0 : i32, i32, i32
  }
  func.func @transform_1(%arg0: i32) -> (i32, i32) {
    %c0_i32 = arith.constant 0 : i32
    %c0_i32_0 = arith.constant 0 : i32
    %c0_i32_1 = arith.constant 0 : i32
    return %c0_i32, %c0_i32_0 : i32, i32
  }
  func.func @transform_2(%arg0: i32) -> (i32, i32) {
    %c0_i32 = arith.constant 0 : i32
    %c0_i32_0 = arith.constant 0 : i32
    %c0_i32_1 = arith.constant 0 : i32
    return %c0_i32, %c0_i32_0 : i32, i32
  }
  func.func @transform_3(%arg0: i32) -> (i32, i32) {
    %c0_i32 = arith.constant 0 : i32
    %c0_i32_0 = arith.constant 0 : i32
    %c0_i32_1 = arith.constant 0 : i32
    return %c0_i32, %c0_i32_0 : i32, i32
  }
  func.func @transform_4(%arg0: i32) -> (i32, i32) {
    %c0_i32 = arith.constant 0 : i32
    %c0_i32_0 = arith.constant 0 : i32
    %c0_i32_1 = arith.constant 0 : i32
    return %c0_i32, %c0_i32_0 : i32, i32
  }
  func.func @transform_5(%arg0: i32) -> (i32, i32, i32) {
    %c0_i32 = arith.constant 0 : i32
    %c0_i32_0 = arith.constant 0 : i32
    %c0_i32_1 = arith.constant 0 : i32
    return %arg0, %c0_i32, %c0_i32_0 : i32, i32, i32
  }
}

</mosaic_0001>

<bundles_post_ra>
// kernel: dgcnn_forward_many.1
= control target key start
LH: loop header
LB: loop body
LE: loop exit
PB: predicated region body
PF: predicated region fallthrough
CT: control target
= control target key end

     0   :  { %v61_v0 = vlaneseq  ;;  %v1618_v19 = vmov 0.0625|0.0625   ;;  %s2226_s0 = inlined_call_operand.vmem [shape: f32[1,4,256], index: 0, kind: input, shape index: {}]   ;;  %s2227_s1 = inlined_call_operand.vmem [shape: bf16[256,512], index: 1, kind: input, shape index: {}]   ;;  %s2228_s2 = inlined_call_operand.vmem [shape: f32[1,512], index: 2, kind: input, shape index: {}]   ;;  %s2229_s3 = inlined_call_operand.vmem [shape: f32[512,8], index: 3, kind: input, shape index: {}]   ;;  %s2230_s4 = inlined_call_operand.vmem [shape: f32[1,8], index: 4, kind: input, shape index: {}]   ;;  %s2231_s5 = inlined_call_operand.hbm [shape: f32[1,4,8], index: 5, kind: output, shape index: {}]  }
   0x1   :  { %v1702_v37 = vld [vmem:[%s2226_s0] sm:$0xff] }
   0x2   :  { %v1652_v1 = vshrl.u32 %v61_v0, 7  ;;  %v1654_v2 = vand.u32 127, %v61_v0  ;;  %v23_v46 = vcombine.high %v1702_v37, %v1702_v37  ;;  %v40_v47 = vmul.f32 %v1702_v37, %v1702_v37 }
   0x4   :  { %v78_v3 = vadd.s32 128, %v1652_v1  ;;  %v79_v4 = vadd.s32 136, %v1652_v1  ;;  %v1659_v5 = vmul.u32 16, %v1654_v2  ;;  %v1662_v6 = vadd.s32 8, %v1652_v1 }
   0x5   :  { %v80_v7 = vadd.s32 144, %v1652_v1  ;;  %v81_v8 = vadd.s32 152, %v1652_v1  ;;  %v64_v14 = vadd.s32 16, %v1652_v1  ;;  %v65_v15 = vadd.s32 24, %v1652_v1 }
   0x6   :  { %v113_v9 = vsub.s32 %v78_v3, %v1659_v5  ;;  %v114_v10 = vsub.s32 %v79_v4, %v1659_v5  ;;  %v97_v11 = vsub.s32 %v1652_v1, %v1659_v5  ;;  %v98_v12 = vsub.s32 %v1662_v6, %v1659_v5 }
   0x7   :  { %v115_v13 = vsub.s32 %v80_v7, %v1659_v5  ;;  %v116_v16 = vsub.s32 %v81_v8, %v1659_v5  ;;  %v99_v17 = vsub.s32 %v64_v14, %v1659_v5  ;;  %v100_v18 = vsub.s32 %v65_v15, %v1659_v5 }
   0x8   :  { %vm145_vm0 = vcmp.ge.s32.totalorder %v113_v9, 0  ;;  %vm146_vm1 = vcmp.ge.s32.totalorder %v114_v10, 0  ;;  %vm177_vm2 = vcmp.lt.s32.totalorder %v113_v9, 16  ;;  %vm178_vm3 = vcmp.lt.s32.totalorder %v114_v10, 16 }
   0x9   :  { %vm209_vm4 = vmand %vm145_vm0, %vm177_vm2  ;;  %vm129_vm5 = vcmp.ge.s32.totalorder %v97_v11, 0  ;;  %vm161_vm6 = vcmp.lt.s32.totalorder %v97_v11, 16  ;;  %vm130_vm8 = vcmp.ge.s32.totalorder %v98_v12, 0  ;;  %vm162_vm9 = vcmp.lt.s32.totalorder %v98_v12, 16 }
   0xa   :  { %vm210_vm7 = vmand %vm146_vm1, %vm178_vm3  ;;  %vm147_vm12 = vcmp.ge.s32.totalorder %v115_v13, 0  ;;  %vm179_vm13 = vcmp.lt.s32.totalorder %v115_v13, 16  ;;  %v82_v20 = vadd.s32 160, %v1652_v1  ;;  %v83_v21 = vadd.s32 168, %v1652_v1 }
   0xb   :  { %vm1391_vm10 = vmpackc.low %vm210_vm7, %vm209_vm4  ;;  %vm148_vm15 = vcmp.ge.s32.totalorder %v116_v16, 0  ;;  %vm180_vm0 = vcmp.lt.s32.totalorder %v116_v16, 16  ;;  %v66_v22 = vadd.s32 32, %v1652_v1  ;;  %v67_v24 = vadd.s32 40, %v1652_v1 }
   0xc   :  { %1392 = vmatprep.subr.msk.bf16.mxu0 %vm1391_vm10, %v1618_v19  ;;  %vm193_vm11 = vmand %vm129_vm5, %vm161_vm6  ;;  %v117_v23 = vsub.s32 %v82_v20, %v1659_v5  ;;  %vm131_vm3 = vcmp.ge.s32.totalorder %v99_v17, 0  ;;  %vm163_vm4 = vcmp.lt.s32.totalorder %v99_v17, 16  ;;  %v118_v25 = vsub.s32 %v83_v21, %v1659_v5 }
   0xd   :  { %vm194_vm14 = vmand %vm130_vm8, %vm162_vm9  ;;  %vm132_vm6 = vcmp.ge.s32.totalorder %v100_v18, 0  ;;  %vm164_vm7 = vcmp.lt.s32.totalorder %v100_v18, 16  ;;  %v84_v26 = vadd.s32 176, %v1652_v1  ;;  %v101_v27 = vsub.s32 %v66_v22, %v1659_v5 }
   0xe   :  { %vm1393_vm1 = vmpackc.low %vm194_vm14, %vm193_vm11  ;;  %v85_v28 = vadd.s32 184, %v1652_v1  ;;  %vm149_vm10 = vcmp.ge.s32.totalorder %v117_v23, 0  ;;  %vm181_vm11 = vcmp.lt.s32.totalorder %v117_v23, 16  ;;  %v102_v29 = vsub.s32 %v67_v24, %v1659_v5 }
   0xf   :  { %1394 = vmatpush3.bf16.msk.msra.mxu0 %vm1393_vm1, %v1618_v19  ;;  %vm211_vm2 = vmand %vm147_vm12, %vm179_vm13  ;;  %vm150_vm13 = vcmp.ge.s32.totalorder %v118_v25, 0  ;;  %vm182_vm14 = vcmp.lt.s32.totalorder %v118_v25, 16  ;;  %v68_v30 = vadd.s32 48, %v1652_v1  ;;  %v119_v31 = vsub.s32 %v84_v26, %v1659_v5 }
  0x10   :  { %vm212_vm5 = vmand %vm148_vm15, %vm180_vm0  ;;  %v69_v32 = vadd.s32 56, %v1652_v1  ;;  %vm133_vm1 = vcmp.ge.s32.totalorder %v101_v27, 0  ;;  %v120_v33 = vsub.s32 %v85_v28, %v1659_v5  ;;  %v86_v34 = vadd.s32 192, %v1652_v1 }
  0x11   :  { %vm1395_vm8 = vmpackc.low %vm212_vm5, %vm211_vm2  ;;  %vm165_vm2 = vcmp.lt.s32.totalorder %v101_v27, 16  ;;  %vm166_vm5 = vcmp.lt.s32.totalorder %v102_v29, 16  ;;  %v103_v35 = vsub.s32 %v68_v30, %v1659_v5  ;;  %v87_v36 = vadd.s32 200, %v1652_v1 }
  0x12   :  { %1396 = vmatprep.subr.msk.bf16.mxu0 %vm1395_vm8, %v1618_v19  ;;  %vm195_vm9 = vmand %vm131_vm3, %vm163_vm4  ;;  %vm134_vm4 = vcmp.ge.s32.totalorder %v102_v29, 0  ;;  %vm151_vm8 = vcmp.ge.s32.totalorder %v119_v31, 0  ;;  %v104_v38 = vsub.s32 %v69_v32, %v1659_v5  ;;  %v70_v39 = vadd.s32 64, %v1652_v1 }
  0x13   :  { %vm196_vm12 = vmand %vm132_vm6, %vm164_vm7  ;;  %v121_v40 = vsub.s32 %v86_v34, %v1659_v5  ;;  %v71_v41 = vadd.s32 72, %v1652_v1  ;;  %v88_v42 = vadd.s32 208, %v1652_v1  ;;  %v122_v44 = vsub.s32 %v87_v36, %v1659_v5 }
  0x14   :  { %vm1397_vm15 = vmpackc.low %vm196_vm12, %vm195_vm9  ;;  %vm183_vm9 = vcmp.lt.s32.totalorder %v119_v31, 16  ;;  %vm184_vm12 = vcmp.lt.s32.totalorder %v120_v33, 16  ;;  %v89_v45 = vadd.s32 216, %v1652_v1  ;;  %v105_v48 = vsub.s32 %v70_v39, %v1659_v5 }
  0x15   :  { %1398 = vmatpush3.bf16.msk.msra.mxu0 %vm1397_vm15, %v1618_v19  ;;  %vm213_vm0 = vmand %vm149_vm10, %vm181_vm11  ;;  %vm152_vm11 = vcmp.ge.s32.totalorder %v120_v33, 0  ;;  %v72_v49 = vadd.s32 80, %v1652_v1  ;;  %v73_v50 = vadd.s32 88, %v1652_v1  ;;  %v106_v52 = vsub.s32 %v71_v41, %v1659_v5 }
  0x16   :  { %vm214_vm3 = vmand %vm150_vm13, %vm182_vm14  ;;  %vm25_vm14 = vcmask 1043456   ;;  %v123_v53 = vsub.s32 %v88_v42, %v1659_v5  ;;  %v124_v54 = vsub.s32 %v89_v45, %v1659_v5  ;;  %v42_v56 = vcombine.high %v40_v47, %v40_v47 }
  0x17   :  { %vm1399_vm6 = vmpackc.low %vm214_vm3, %vm213_vm0  ;;  %vm135_vm0 = vcmp.ge.s32.totalorder %v103_v35, 0  ;;  %vm136_vm3 = vcmp.ge.s32.totalorder %v104_v38, 0  ;;  %v26_v51 = vsel %vm25_vm14, %v1702_v37, 0.0  ;;  %v33_v55 = vsel %vm25_vm14, %v23_v46, 0.0 }
  0x18   :  { %1400 = vmatprep.subr.msk.bf16.mxu0 %vm1399_vm6, %v1618_v19  ;;  %vm197_vm7 = vmand %vm133_vm1, %vm165_vm2  ;;  %vm167_vm1 = vcmp.lt.s32.totalorder %v103_v35, 16  ;;  %v27_v57 = vrot.slane %v26_v51, 4  ;;  %v44_v58 = vsel %vm25_vm14, %v40_v47, 0.0  ;;  %v107_v60 = vsub.s32 %v72_v49, %v1659_v5 }
  0x19   :  { %vm198_vm10 = vmand %vm134_vm4, %vm166_vm5  ;;  %vm168_vm4 = vcmp.lt.s32.totalorder %v104_v38, 16  ;;  %v108_v61 = vsub.s32 %v73_v50, %v1659_v5  ;;  %v90_v62 = vadd.s32 224, %v1652_v1  ;;  %v91_v63 = vadd.s32 232, %v1652_v1 }
  0x1a   :  { %vm1401_vm13 = vmpackc.low %vm198_vm10, %vm197_vm7  ;;  %vm153_vm7 = vcmp.ge.s32.totalorder %v121_v40, 0  ;;  %vm154_vm10 = vcmp.ge.s32.totalorder %v122_v44, 0  ;;  %v74_v3 = vadd.s32 96, %v1652_v1  ;;  %v34_v4 = vrot.slane %v33_v55, 4 }
  0x1b   :  { %1402 = vmatpush3.bf16.msk.msra.mxu0 %vm1401_vm13, %v1618_v19  ;;  %vm1711_vm15 = vmand %vm151_vm8, %vm183_vm9  ;;  %vm185_vm8 = vcmp.lt.s32.totalorder %v121_v40, 16  ;;  %v51_v7 = vsel %vm25_vm14, %v42_v56, 0.0  ;;  %v45_v8 = vrot.slane %v44_v58, 4  ;;  %v28_v10 = vadd.f32 %v27_v57, %v26_v51 }
  0x1c   :  { %vm216_vm2 = vmand %vm152_vm11, %vm184_vm12  ;;  %vm186_vm11 = vcmp.lt.s32.totalorder %v122_v44, 16  ;;  %v52_v9 = vrot.slane %v51_v7, 4  ;;  %v125_v11 = vsub.s32 %v90_v62, %v1659_v5  ;;  %v75_v12 = vadd.s32 104, %v1652_v1 }
  0x1d   :  { %vm1403_vm5 = vmpackc.low %vm216_vm2, %vm1711_vm15  ;;  %vm137_vm15 = vcmp.ge.s32.totalorder %v105_v48, 0  ;;  %vm138_vm2 = vcmp.ge.s32.totalorder %v106_v52, 0  ;;  %v35_v13 = vadd.f32 %v34_v4, %v33_v55  ;;  %v46_v14 = vadd.f32 %v45_v8, %v44_v58 }
  0x1e   :  { %1404 = vmatprep.subr.msk.bf16.mxu0 %vm1403_vm5, %v1618_v19  ;;  %vm199_vm6 = vmand %vm135_vm0, %vm167_vm1  ;;  %vm169_vm0 = vcmp.lt.s32.totalorder %v105_v48, 16  ;;  %v126_v16 = vsub.s32 %v91_v63, %v1659_v5  ;;  %v53_v17 = vadd.f32 %v52_v9, %v51_v7  ;;  %v109_v18 = vsub.s32 %v74_v3, %v1659_v5 }
  0x1f   :  { %vm200_vm9 = vmand %vm136_vm3, %vm168_vm4  ;;  %vm170_vm3 = vcmp.lt.s32.totalorder %v106_v52, 16  ;;  %vm155_vm4 = vcmp.ge.s32.totalorder %v123_v53, 0  ;;  %v92_v20 = vadd.s32 240, %v1652_v1  ;;  %v93_v21 = vadd.s32 248, %v1652_v1 }
  0x20   :  { %vm1405_vm12 = vmpackc.low %vm200_vm9, %vm199_vm6  ;;  %vm156_vm6 = vcmp.ge.s32.totalorder %v124_v54, 0  ;;  %v36_v22 = vrot.slane %v35_v13, 2  ;;  %v76_v23 = vadd.s32 112, %v1652_v1  ;;  %v54_v24 = vrot.slane %v53_v17, 2 }
  0x21   :  { %1406 = vmatpush3.bf16.msk.msra.mxu0 %vm1405_vm12, %v1618_v19  ;;  %vm1737_vm13 = vmand %vm153_vm7, %vm185_vm8  ;;  %vm187_vm7 = vcmp.lt.s32.totalorder %v123_v53, 16  ;;  %vm188_vm8 = vcmp.lt.s32.totalorder %v124_v54, 16  ;;  %vm140_vm12 = vcmp.ge.s32.totalorder %v108_v61, 0  ;;  %v29_v25 = vrot.slane %v28_v10, 2 }
  0x22   :  { %vm218_vm1 = vmand %vm154_vm10, %vm186_vm11  ;;  %vm139_vm11 = vcmp.ge.s32.totalorder %v107_v60, 0  ;;  %v47_v26 = vrot.slane %v46_v14, 2  ;;  %v110_v28 = vsub.s32 %v75_v12, %v1659_v5  ;;  %v37_v29 = vadd.f32 %v36_v22, %v35_v13 }
  0x23   :  { %vm1407_vm5 = vmpackc.low %vm218_vm1, %vm1737_vm13  ;;  %v77_v30 = vadd.s32 120, %v1652_v1  ;;  %v55_v31 = vadd.f32 %v54_v24, %v53_v17  ;;  %v127_v32 = vsub.s32 %v92_v20, %v1659_v5  ;;  %v128_v33 = vsub.s32 %v93_v21, %v1659_v5 }
  0x24   :  { %1408 = vmatprep.subr.msk.bf16.mxu0 %vm1407_vm5, %v1618_v19  ;;  %vm1749_vm9 = vmand %vm137_vm15, %vm169_vm0  ;;  %vm171_vm15 = vcmp.lt.s32.totalorder %v107_v60, 16  ;;  %vm172_vm0 = vcmp.lt.s32.totalorder %v108_v61, 16  ;;  %vm189_vm5 = vcmp.lt.s32.totalorder %v125_v11, 16  ;;  %v38_v34 = vrot.slane %v37_v29, 1 }
  0x25   :  { %vm202_vm10 = vmand %vm138_vm2, %vm170_vm3  ;;  %v56_v35 = vrot.slane %v55_v31, 1  ;;  %v30_v36 = vadd.f32 %v29_v25, %v28_v10  ;;  %v48_v38 = vadd.f32 %v47_v26, %v46_v14  ;;  %v111_v40 = vsub.s32 %v76_v23, %v1659_v5 }
  0x26   :  { %vm1409_vm13 = vmpackc.low %vm202_vm10, %vm1749_vm9  ;;  %vm141_vm10 = vcmp.ge.s32.totalorder %v109_v18, 0  ;;  %v39_v39 = vadd.f32 %v38_v34, %v37_v29  ;;  %v112_v42 = vsub.s32 %v77_v30, %v1659_v5 }
  0x27   :  { %1410 = vmatpush3.bf16.msk.msra.mxu0 %vm1409_vm13, %v1618_v19  ;;  %vm1763_vm14 = vmand %vm155_vm4, %vm187_vm7  ;;  %vm157_vm4 = vcmp.ge.s32.totalorder %v125_v11, 0  ;;  %vm158_vm7 = vcmp.ge.s32.totalorder %v126_v16, 0  ;;  %vm173_vm13 = vcmp.lt.s32.totalorder %v109_v18, 16  ;;  %v57_v41 = vadd.f32 %v56_v35, %v55_v31 }
  0x28   :  { %vm220_vm1 = vmand %vm156_vm6, %vm188_vm8  ;;  %vm190_vm8 = vcmp.lt.s32.totalorder %v126_v16, 16  ;;  %v31_v44 = vrot.slane %v30_v36, 1  ;;  %v49_v45 = vrot.slane %v48_v38, 1 }
  0x29   :  { %vm1411_vm2 = vmpackc.low %vm220_vm1, %vm1763_vm14  ;;  %vm142_vm14 = vcmp.ge.s32.totalorder %v110_v28, 0 }
  0x2a   :  { %1412 = vmatprep.subr.msk.bf16.mxu0 %vm1411_vm2, %v1618_v19  ;;  %vm1779_vm3 = vmand %vm139_vm11, %vm171_vm15  ;;  %vm174_vm15 = vcmp.lt.s32.totalorder %v110_v28, 16  ;;  %v32_v46 = vadd.f32 %v31_v44, %v30_v36  ;;  %v50_v47 = vadd.f32 %v49_v45, %v48_v38 }
  0x2b   :  { %vm204_vm6 = vmand %vm140_vm12, %vm172_vm0  ;;  %vm2232_vm0 = vcmask 1040384  }
  0x2c   :  { %vm1413_vm9 = vmpackc.low %vm204_vm6, %vm1779_vm3  ;;  %vm159_vm3 = vcmp.ge.s32.totalorder %v127_v32, 0  ;;  %v60_v43 = vsel %vm2232_vm0, %v39_v39, %v57_v41 }
  0x2d   :  { %1414 = vmatpush3.bf16.msk.msra.mxu0 %vm1413_vm9, %v1618_v19  ;;  %vm221_vm11 = vmand %vm157_vm4, %vm189_vm5  ;;  %vm160_vm4 = vcmp.ge.s32.totalorder %v128_v33, 0  ;;  %vm191_vm5 = vcmp.lt.s32.totalorder %v127_v32, 16  ;;  %vm192_vm9 = vcmp.lt.s32.totalorder %v128_v33, 16  ;;  %321 = vmatprep.mubr.f32.mxu0 %v60_v43 }
  0x2e   :  { %vm222_vm12 = vmand %vm158_vm7, %vm190_vm8 }
  0x2f   :  { %vm1415_vm1 = vmpackc.low %vm222_vm12, %vm221_vm11  ;;  %vm143_vm11 = vcmp.ge.s32.totalorder %v111_v40, 0  ;;  %vm175_vm12 = vcmp.lt.s32.totalorder %v111_v40, 16 }
  0x30   :  { %1416 = vmatprep.subr.msk.bf16.mxu0 %vm1415_vm1, %v1618_v19  ;;  %vm205_vm2 = vmand %vm141_vm10, %vm173_vm13  ;;  %vm144_vm10 = vcmp.ge.s32.totalorder %v112_v42, 0  ;;  %vm176_vm13 = vcmp.lt.s32.totalorder %v112_v42, 16 }
  0x31   :  { %vm206_vm6 = vmand %vm142_vm14, %vm174_vm15 }
  0x32   :  { %vm1417_vm7 = vmpackc.low %vm206_vm6, %vm205_vm2  ;;  %vm2243_vm6 = vcmask 1040384  }
  0x33   :  { %1418 = vmatpush3.bf16.msk.msra.mxu0 %vm1417_vm7, %v1618_v19  ;;  %vm223_vm8 = vmand %vm159_vm3, %vm191_vm5  ;;  %v59_v5 = vsel %vm2243_vm6, %v32_v46, %v50_v47 }
  0x34   :  { %vm224_vm1 = vmand %vm160_vm4, %vm192_vm9 }
  0x35   :  { %vm1419_vm14 = vmpackc.low %vm224_vm1, %vm223_vm8 }
  0x36   :  { %1420 = vmatprep.subr.msk.bf16.mxu0 %vm1419_vm14, %v1618_v19  ;;  %vm207_vm15 = vmand %vm143_vm11, %vm175_vm12 }
  0x37   :  { %vm208_vm0 = vmand %vm144_vm10, %vm176_vm13 }
  0x38   :  { %vm1421_vm2 = vmpackc.low %vm208_vm0, %vm207_vm15 }
  0x39   :  { %1422 = vmatpush3.bf16.msk.msra.mxu0 %vm1421_vm2, %v1618_v19 }
  0x3a   :  { %10 = vsyncpa [#allocation3], 0  ;;  %v336_v48 = vadd.s32 128, %v1654_v2  ;;  %v337_v49 = vmul.u32 16, %v1652_v1  ;;  %v338_v50 = vmul.u32 16, %v1662_v6  ;;  %v1619_v55 = vmov 0.0  }
  0x3b   :  { %427 = vmatprep.mubr.f32.mxu1 %v1619_v55  ;;  %v1620_v6 = vmov 1.0|1.0   ;;  %v1499_v19 = vld [vmem:[%s2227_s1 + $0x8] ss:$16 sps:$4 sm:$0xff]   ;;  %v1501_v56 = vld [vmem:[%s2227_s1 + $0xc] ss:$16 sps:$4 sm:$0xff]  }
  0x3c   :  { %322 = vmatmul.mubr.f32.vlgmr.msra.gmra.mrb[0].mxu0 %v59_v5  ;;  %v340_v51 = vsub.s32 %v336_v48, %v337_v49  ;;  %v342_v52 = vsub.s32 %v336_v48, %v338_v50  ;;  %v339_v53 = vsub.s32 %v1654_v2, %v337_v49  ;;  %v341_v54 = vsub.s32 %v1654_v2, %v338_v50  ;;  %v1498_v2 = vld [vmem:[%s2227_s1 + $0x4] ss:$16 sps:$4 sm:$0xff]   ;;  %v1507_v57 = vld [vmem:[%s2227_s1 + $0x2c] ss:$16 sps:$4 sm:$0xff]   ;;  %v1505_v58 = vld [vmem:[%s2227_s1 + $0x28] ss:$16 sps:$4 sm:$0xff]  }
  0x3d   :  { %912 = vmatprep.subr.bf16.mxu0 %v1501_v56  ;;  %v1513_v59 = vld [vmem:[%s2227_s1 + $0x4c] ss:$16 sps:$4 sm:$0xff]   ;;  %v1511_v60 = vld [vmem:[%s2227_s1 + $0x48] ss:$16 sps:$4 sm:$0xff]   ;;  %vm359_vm2 = vcmask 130048   ;;  %s1621_s13 = smov [#allocation2]  }
  0x3e   :  { %vm344_vm0 = vcmp.ge.s32.totalorder %v340_v51, 0  ;;  %vm346_vm3 = vcmp.ge.s32.totalorder %v342_v52, 0  ;;  %vm348_vm4 = vcmp.lt.s32.totalorder %v340_v51, 16  ;;  %vm350_vm5 = vcmp.lt.s32.totalorder %v342_v52, 16  ;;  %913 = vmatpush1.bf16.msra.mxu0 %v1499_v19  ;;  %v1519_v61 = vld [vmem:[%s2227_s1 + $0x6c] ss:$16 sps:$4 sm:$0xff]  }
  0x3f   :  { %vm352_vm9 = vmand %vm344_vm0, %vm348_vm4  ;;  %vm343_vm7 = vcmp.ge.s32.totalorder %v339_v53, 0  ;;  %vm347_vm8 = vcmp.lt.s32.totalorder %v339_v53, 16  ;;  %vm345_vm12 = vcmp.ge.s32.totalorder %v341_v54, 0  ;;  %vm349_vm1 = vcmp.lt.s32.totalorder %v341_v54, 16  ;;  %914 = vmatprep.subr.bf16.mxu0 %v1507_v57  ;;  %v1517_v62 = vld [vmem:[%s2227_s1 + $0x68] ss:$16 sps:$4 sm:$0xff]  }
  0x40   :  { %vm354_vm11 = vmand %vm346_vm3, %vm350_vm5  ;;  %v1525_v63 = vld [vmem:[%s2227_s1 + $0x8c] ss:$16 sps:$4 sm:$0xff]   ;;  %v1523_v0 = vld [vmem:[%s2227_s1 + $0x88] ss:$16 sps:$4 sm:$0xff]   ;;  %s1176_s14 = sshll.u32 %s1621_s13, 4  ;;  %vm1168_vm0 = vcmask 60416   ;;  %s1177_s14 = int_to_ptr.vmem [resolvable:$true] %s1176_s14 }
  0x41   :  { %vm1423_vm10 = vmpackc.low %vm354_vm11, %vm352_vm9  ;;  %v1531_v3 = vld [vmem:[%s2227_s1 + $0xac] ss:$16 sps:$4 sm:$0xff]   ;;  %v1529_v4 = vld [vmem:[%s2227_s1 + $0xa8] ss:$16 sps:$4 sm:$0xff]   ;;  %s1594_s15 = scalar_lea.vmem %s1177_s14, 64  ;;  %p1599_p1 = scmp.lt.s32.totalorder %s1177_s14, %s1177_s14 }
  0x42   :  { %1424 = vmatprep.subr.msk.bf16.mxu1 %vm1423_vm10, %v1620_v6  ;;  %vm351_vm13 = vmand %vm343_vm7, %vm347_vm8  ;;  %915 = vmatpush1.bf16.msra.mxu0 %v1505_v58  ;;  %v1537_v7 = vld [vmem:[%s2227_s1 + $0xcc] ss:$16 sps:$4 sm:$0xff]   ;;  %v1535_v8 = vld [vmem:[%s2227_s1 + $0xc8] ss:$16 sps:$4 sm:$0xff]   ;;  %p1595_p0 = scmp.ne.s32.totalorder %s1177_s14, %s1594_s15  ;;  %p1600_p2 = scmp.lt.s32.totalorder %s1594_s15, %s1594_s15 }
  0x43   :  { %vm353_vm14 = vmand %vm345_vm12, %vm349_vm1  ;;  %916 = vmatprep.subr.bf16.mxu0 %v1513_v59  ;;  %v1543_v9 = vld [vmem:[%s2227_s1 + $0xec] ss:$16 sps:$4 sm:$0xff]   ;;  %v1541_v10 = vld [vmem:[%s2227_s1 + $0xe8] ss:$16 sps:$4 sm:$0xff]  }
  0x44   :  { %vm1425_vm15 = vmpackc.low %vm353_vm14, %vm351_vm13  ;;  %v1549_v11 = vld [vmem:[%s2227_s1 + $0x10c] ss:$16 sps:$4 sm:$0xff]   ;;  %v1547_v12 = vld [vmem:[%s2227_s1 + $0x108] ss:$16 sps:$4 sm:$0xff]   ;;  %p1601_p3 = por %p1600_p2, %p1599_p1 }
  0x45   :  { %1426 = vmatpush1.bf16.msk.msra.mxu1 %vm1425_vm15, %v1620_v6  ;;  %v1555_v13 = vld [vmem:[%s2227_s1 + $0x12c] ss:$16 sps:$4 sm:$0xff]   ;;  %v1553_v14 = vld [vmem:[%s2227_s1 + $0x128] ss:$16 sps:$4 sm:$0xff]   ;;  %v1496_v30 = vld [vmem:[%s2227_s1] ss:$16 sps:$4 sm:$0xff]  }
  0x46   :  { %871 = vmatprep.subr.bf16.mxu1 %v1498_v2  ;;  %917 = vmatpush1.bf16.msra.mxu0 %v1511_v60  ;;  %v1561_v15 = vld [vmem:[%s2227_s1 + $0x14c] ss:$16 sps:$4 sm:$0xff]   ;;  %v1559_v16 = vld [vmem:[%s2227_s1 + $0x148] ss:$16 sps:$4 sm:$0xff]   ;;  %v1504_v32 = vld [vmem:[%s2227_s1 + $0x24] ss:$16 sps:$4 sm:$0xff]   ;;  %p1602_p4 = pnand %p1601_p3, %p1595_p0 }
  0x47   :  { %918 = vmatprep.subr.bf16.mxu0 %v1519_v61  ;;  %v1567_v17 = vld [vmem:[%s2227_s1 + $0x16c] ss:$16 sps:$4 sm:$0xff]   ;;  %v1565_v18 = vld [vmem:[%s2227_s1 + $0x168] ss:$16 sps:$4 sm:$0xff]   ;;  %v1502_v34 = vld [vmem:[%s2227_s1 + $0x20] ss:$16 sps:$4 sm:$0xff]  }
  0x48   :  { %v1573_v20 = vld [vmem:[%s2227_s1 + $0x18c] ss:$16 sps:$4 sm:$0xff]   ;;  %v1571_v21 = vld [vmem:[%s2227_s1 + $0x188] ss:$16 sps:$4 sm:$0xff]   ;;  %v1510_v35 = vld [vmem:[%s2227_s1 + $0x44] ss:$16 sps:$4 sm:$0xff]  }
  0x49   :  { %v1508_v36 = vld [vmem:[%s2227_s1 + $0x40] ss:$16 sps:$4 sm:$0xff]   ;;  %v1516_v38 = vld [vmem:[%s2227_s1 + $0x64] ss:$16 sps:$4 sm:$0xff]   ;;  %v1579_v19 = vld [vmem:[%s2227_s1 + $0x1ac] ss:$16 sps:$4 sm:$0xff]  }
  0x4a   :  { %919 = vmatpush1.bf16.msra.mxu0 %v1517_v62  ;;  %v1514_v39 = vld [vmem:[%s2227_s1 + $0x60] ss:$16 sps:$4 sm:$0xff]   ;;  %v1522_v40 = vld [vmem:[%s2227_s1 + $0x84] ss:$16 sps:$4 sm:$0xff]   ;;  %v1577_v57 = vld [vmem:[%s2227_s1 + $0x1a8] ss:$16 sps:$4 sm:$0xff]  }
  0x4b   :  { %920 = vmatprep.subr.bf16.mxu0 %v1525_v63  ;;  %v1520_v41 = vld [vmem:[%s2227_s1 + $0x80] ss:$16 sps:$4 sm:$0xff]   ;;  %v1528_v42 = vld [vmem:[%s2227_s1 + $0xa4] ss:$16 sps:$4 sm:$0xff]   ;;  %v1585_v59 = vld [vmem:[%s2227_s1 + $0x1cc] ss:$16 sps:$4 sm:$0xff]  }
  0x4c   :  { %v1526_v43 = vld [vmem:[%s2227_s1 + $0xa0] ss:$16 sps:$4 sm:$0xff]   ;;  %v1534_v44 = vld [vmem:[%s2227_s1 + $0xc4] ss:$16 sps:$4 sm:$0xff]   ;;  %v1583_v61 = vld [vmem:[%s2227_s1 + $0x1c8] ss:$16 sps:$4 sm:$0xff]  }
  0x4d   :  { %v1532_v45 = vld [vmem:[%s2227_s1 + $0xc0] ss:$16 sps:$4 sm:$0xff]   ;;  %v1540_v46 = vld [vmem:[%s2227_s1 + $0xe4] ss:$16 sps:$4 sm:$0xff]  }
  0x4e   :  { %921 = vmatpush1.bf16.msra.mxu0 %v1523_v0  ;;  %v1538_v47 = vld [vmem:[%s2227_s1 + $0xe0] ss:$16 sps:$4 sm:$0xff]   ;;  %v1546_v5 = vld [vmem:[%s2227_s1 + $0x104] ss:$16 sps:$4 sm:$0xff]   ;;  %v1589_v0 = vld [vmem:[%s2227_s1 + $0x1e8] ss:$16 sps:$4 sm:$0xff]  }
  0x4f   :  { %922 = vmatprep.subr.bf16.mxu0 %v1531_v3  ;;  %v1544_v48 = vld [vmem:[%s2227_s1 + $0x100] ss:$16 sps:$4 sm:$0xff]   ;;  %v1552_v49 = vld [vmem:[%s2227_s1 + $0x124] ss:$16 sps:$4 sm:$0xff]   ;;  %v1591_v3 = vld [vmem:[%s2227_s1 + $0x1ec] ss:$16 sps:$4 sm:$0xff]  }
  0x50   :  { %v1550_v50 = vld [vmem:[%s2227_s1 + $0x120] ss:$16 sps:$4 sm:$0xff]   ;;  %v1558_v51 = vld [vmem:[%s2227_s1 + $0x144] ss:$16 sps:$4 sm:$0xff]  }
  0x51   :  { %v1556_v52 = vld [vmem:[%s2227_s1 + $0x140] ss:$16 sps:$4 sm:$0xff]   ;;  %v1564_v53 = vld [vmem:[%s2227_s1 + $0x164] ss:$16 sps:$4 sm:$0xff]  }
  0x52   :  { %923 = vmatpush1.bf16.msra.mxu0 %v1529_v4  ;;  %v1562_v54 = vld [vmem:[%s2227_s1 + $0x160] ss:$16 sps:$4 sm:$0xff]   ;;  %v1570_v55 = vld [vmem:[%s2227_s1 + $0x184] ss:$16 sps:$4 sm:$0xff]  }
  0x53   :  { %924 = vmatprep.subr.bf16.mxu0 %v1537_v7  ;;  %v1568_v6 = vld [vmem:[%s2227_s1 + $0x180] ss:$16 sps:$4 sm:$0xff]   ;;  %v1576_v2 = vld [vmem:[%s2227_s1 + $0x1a4] ss:$16 sps:$4 sm:$0xff]   ;;  %v974_v7 = vld [vmem:[%s2229_s3 + $0x88] sm:$0xff] }
  0x54   :  { %v1574_v56 = vld [vmem:[%s2227_s1 + $0x1a0] ss:$16 sps:$4 sm:$0xff]   ;;  %v1582_v58 = vld [vmem:[%s2227_s1 + $0x1c4] ss:$16 sps:$4 sm:$0xff]  }
  0x55   :  { %v1580_v60 = vld [vmem:[%s2227_s1 + $0x1c0] ss:$16 sps:$4 sm:$0xff]   ;;  %v1588_v63 = vld [vmem:[%s2227_s1 + $0x1e4] ss:$16 sps:$4 sm:$0xff]  }
  0x56   :  { %925 = vmatpush1.bf16.msra.mxu0 %v1535_v8  ;;  %v1586_v62 = vld [vmem:[%s2227_s1 + $0x1e0] ss:$16 sps:$4 sm:$0xff]  }
  0x57   :  { %926 = vmatprep.subr.bf16.mxu0 %v1543_v9  ;;  %v973_v4 = vld [vmem:[%s2229_s3 + $0x80] sm:$0xff] }
  0x58   :  { %v1005_v8 = vld [vmem:[%s2229_s3 + $0x180] sm:$0xff]  ;;  %v1427_v9 = vpack.c.bf16 %v974_v7, %v973_v4  ;;  %v1014_v7 = vld [vmem:[%s2229_s3 + $0x1c8] sm:$0xff] }
  0x59   :  { %v1013_v4 = vld [vmem:[%s2229_s3 + $0x1c0] sm:$0xff] }
  0x5a   :  { %927 = vmatpush1.bf16.msra.mxu0 %v1541_v10  ;;  %v1006_v10 = vld [vmem:[%s2229_s3 + $0x188] sm:$0xff] }
  0x5b   :  { %928 = vmatprep.subr.bf16.mxu0 %v1549_v11  ;;  %v1459_v11 = vpack.c.bf16 %v1006_v10, %v1005_v8  ;;  %v965_v10 = vld [vmem:[%s2229_s3 + $0x40] sm:$0xff] }
  0x5e   :  { %929 = vmatpush1.bf16.msra.mxu0 %v1547_v12  ;;  %v2014_v12 = vsub.s32 0, %v1652_v1 }
  0x5f   :  { %930 = vmatprep.subr.bf16.mxu0 %v1555_v13  ;;  %v2017_v13 = vsub.s32 1, %v1652_v1 }
  0x62   :  { %931 = vmatpush1.bf16.msra.mxu0 %v1553_v14 }
  0x63   :  { %932 = vmatprep.subr.bf16.mxu0 %v1561_v15 }
  0x66   :  { %933 = vmatpush1.bf16.msra.mxu0 %v1559_v16 }
  0x67   :  { %934 = vmatprep.subr.bf16.mxu0 %v1567_v17 }
  0x6a   :  { %935 = vmatpush1.bf16.msra.mxu0 %v1565_v18 }
  0x6b   :  { %936 = vmatprep.subr.bf16.mxu0 %v1573_v20 }
  0x6e   :  { %937 = vmatpush1.bf16.msra.mxu0 %v1571_v21 }
  0x6f   :  { %938 = vmatprep.subr.bf16.mxu0 %v1579_v19  ;;  %v1012_v19 = vld [vmem:[%s2229_s3 + $0x1b8] sm:$0xff] }
  0x72   :  { %939 = vmatpush1.bf16.msra.mxu0 %v1577_v57 }
  0x73   :  { %940 = vmatprep.subr.bf16.mxu0 %v1585_v59  ;;  %v964_v59 = vld [vmem:[%s2229_s3 + $0x38] sm:$0xff] }
  0x76   :  { %941 = vmatpush1.bf16.msra.mxu0 %v1583_v61 }
  0x77   :  { %942 = vmatprep.subr.bf16.mxu0 %v1591_v3  ;;  %v982_v3 = vld [vmem:[%s2229_s3 + $0xc8] sm:$0xff] }
  0x7a   :  { %943 = vmatpush1.bf16.msra.mxu0 %v1589_v0  ;;  %v981_v0 = vld [vmem:[%s2229_s3 + $0xc0] sm:$0xff] }
  0x7b   :  { %1460 = vmatprep.subr.bf16.mxu0 %v1459_v11  ;;  %v966_v11 = vld [vmem:[%s2229_s3 + $0x48] sm:$0xff] }
 0x10f   :  { %v1318_v22 = vpop.f32.mrb[0].mxu0 }
 0x110   :  { %v1319_v23 = vpop.f32.mrb[1].mxu0 }
 0x111   :  { %v1320_v24 = vadd.f32 %v1319_v23, %v1318_v22 }
 0x113   :  { %v327_v25 = vmul.f32 0.25, %v1320_v24 }
 0x115   :  { %v328_v26 = vmul.f32 %v327_v25, %v327_v25 }
 0x117   :  { %v330_v27 = vrot.slane %v328_v26, 7  ;;  %v958_v26 = vld [vmem:[%s2229_s3 + $0x8] sm:$0xff] }
 0x119   :  { %v332_v28 = vsub.f32 %v327_v25, %v330_v27  ;;  %v989_v27 = vld [vmem:[%s2229_s3 + $0x100] sm:$0xff] }
 0x11b   :  { %v333_v29 = vadd.f32 1e-05, %v332_v28  ;;  %v990_v28 = vld [vmem:[%s2229_s3 + $0x108] sm:$0xff] }
 0x11d   :  { %1592 = vrsqrt.f32 %v333_v29 }
 0x127   :  { %v1593_v31 = vpop.eup %1592 }
 0x128   :  { %v335_v33 = vsel %vm2243_vm6, %v327_v25, %v1593_v31  ;;  %v957_v25 = vld [vmem:[%s2229_s3] sm:$0xff]  ;;  %v1007_v31 = vld [vmem:[%s2229_s3 + $0x190] sm:$0xff] }
 0x129   :  { %1220 = vmatmul.mubr.msk.f32.vlgmr.msra.gmra.mrb[0].mxu1 %vm359_vm2, %v335_v33 }
 0x12a   :  { %872 = vmatpush1.bf16.msra.mxu1 %v1496_v30  ;;  %v976_v30 = vld [vmem:[%s2229_s3 + $0x98] sm:$0xff] }
 0x12b   :  { %873 = vmatprep.subr.bf16.mxu1 %v1504_v32  ;;  %v1008_v32 = vld [vmem:[%s2229_s3 + $0x198] sm:$0xff] }
 0x12e   :  { %874 = vmatpush1.bf16.msra.mxu1 %v1502_v34  ;;  %v1429_v34 = vpack.c.bf16 %v958_v26, %v957_v25  ;;  %v967_v25 = vld [vmem:[%s2229_s3 + $0x50] sm:$0xff]  ;;  %v968_v26 = vld [vmem:[%s2229_s3 + $0x58] sm:$0xff] }
 0x12f   :  { %875 = vmatprep.subr.bf16.mxu1 %v1510_v35  ;;  %v1461_v35 = vpack.c.bf16 %v990_v28, %v989_v27 }
 0x132   :  { %876 = vmatpush1.bf16.msra.mxu1 %v1508_v36  ;;  %v959_v36 = vld [vmem:[%s2229_s3 + $0x10] sm:$0xff] }
 0x133   :  { %877 = vmatprep.subr.bf16.mxu1 %v1516_v38  ;;  %v960_v38 = vld [vmem:[%s2229_s3 + $0x18] sm:$0xff] }
 0x136   :  { %878 = vmatpush1.bf16.msra.mxu1 %v1514_v39 }
 0x137   :  { %879 = vmatprep.subr.bf16.mxu1 %v1522_v40 }
 0x13a   :  { %880 = vmatpush1.bf16.msra.mxu1 %v1520_v41  ;;  %v1463_v41 = vpack.c.bf16 %v1008_v32, %v1007_v31  ;;  %v986_v31 = vld [vmem:[%s2229_s3 + $0xe8] sm:$0xff]  ;;  %v1017_v32 = vld [vmem:[%s2229_s3 + $0x1e0] sm:$0xff] }
 0x13b   :  { %881 = vmatprep.subr.bf16.mxu1 %v1528_v42  ;;  %v991_v42 = vld [vmem:[%s2229_s3 + $0x110] sm:$0xff] }
 0x13e   :  { %882 = vmatpush1.bf16.msra.mxu1 %v1526_v43  ;;  %v992_v43 = vld [vmem:[%s2229_s3 + $0x118] sm:$0xff] }
 0x13f   :  { %883 = vmatprep.subr.bf16.mxu1 %v1534_v44  ;;  %v977_v44 = vld [vmem:[%s2229_s3 + $0xa0] sm:$0xff] }
 0x142   :  { %884 = vmatpush1.bf16.msra.mxu1 %v1532_v45  ;;  %v978_v45 = vld [vmem:[%s2229_s3 + $0xa8] sm:$0xff] }
 0x143   :  { %885 = vmatprep.subr.bf16.mxu1 %v1540_v46  ;;  %v1009_v46 = vld [vmem:[%s2229_s3 + $0x1a0] sm:$0xff] }
 0x146   :  { %886 = vmatpush1.bf16.msra.mxu1 %v1538_v47  ;;  %v1010_v47 = vld [vmem:[%s2229_s3 + $0x1a8] sm:$0xff] }
 0x147   :  { %887 = vmatprep.subr.bf16.mxu1 %v1546_v5  ;;  %v1433_v5 = vpack.c.bf16 %v960_v38, %v959_v36 }
 0x14a   :  { %888 = vmatpush1.bf16.msra.mxu1 %v1544_v48  ;;  %v1465_v48 = vpack.c.bf16 %v992_v43, %v991_v42  ;;  %v1002_v43 = vld [vmem:[%s2229_s3 + $0x168] sm:$0xff] }
 0x14b   :  { %889 = vmatprep.subr.bf16.mxu1 %v1552_v49  ;;  %v961_v49 = vld [vmem:[%s2229_s3 + $0x20] sm:$0xff] }
 0x14e   :  { %890 = vmatpush1.bf16.msra.mxu1 %v1550_v50  ;;  %v962_v50 = vld [vmem:[%s2229_s3 + $0x28] sm:$0xff] }
 0x14f   :  { %891 = vmatprep.subr.bf16.mxu1 %v1558_v51  ;;  %v1435_v51 = vpack.c.bf16 %v978_v45, %v977_v44  ;;  %v987_v45 = vld [vmem:[%s2229_s3 + $0xf0] sm:$0xff] }
 0x152   :  { %892 = vmatpush1.bf16.msra.mxu1 %v1556_v52  ;;  %v1467_v52 = vpack.c.bf16 %v1010_v47, %v1009_v46  ;;  %v988_v46 = vld [vmem:[%s2229_s3 + $0xf8] sm:$0xff]  ;;  %v1019_v47 = vld [vmem:[%s2229_s3 + $0x1f0] sm:$0xff] }
 0x153   :  { %893 = vmatprep.subr.bf16.mxu1 %v1564_v53  ;;  %v993_v53 = vld [vmem:[%s2229_s3 + $0x120] sm:$0xff] }
 0x156   :  { %894 = vmatpush1.bf16.msra.mxu1 %v1562_v54  ;;  %v994_v54 = vld [vmem:[%s2229_s3 + $0x128] sm:$0xff] }
 0x157   :  { %895 = vmatprep.subr.bf16.mxu1 %v1570_v55  ;;  %v979_v55 = vld [vmem:[%s2229_s3 + $0xb0] sm:$0xff]  ;;  %v1469_v57 = vpack.c.bf16 %v994_v54, %v993_v53  ;;  %v1004_v54 = vld [vmem:[%s2229_s3 + $0x178] sm:$0xff] }
 0x158   :  { %v1003_v53 = vld [vmem:[%s2229_s3 + $0x170] sm:$0xff] }
 0x15a   :  { %896 = vmatpush1.bf16.msra.mxu1 %v1568_v6  ;;  %v980_v6 = vld [vmem:[%s2229_s3 + $0xb8] sm:$0xff] }
 0x15b   :  { %897 = vmatprep.subr.bf16.mxu1 %v1576_v2  ;;  %v1011_v2 = vld [vmem:[%s2229_s3 + $0x1b0] sm:$0xff] }
 0x15c   :  { %v1471_v61 = vpack.c.bf16 %v1012_v19, %v1011_v2  ;;  %v529_v2 = vld [vmem:[%s2228_s2] sm:$0xf]  ;;  %v545_v19 = vsub.s32 3, %v1652_v1 }
 0x15e   :  { %898 = vmatpush1.bf16.msra.mxu1 %v1574_v56  ;;  %v1437_v56 = vpack.c.bf16 %v962_v50, %v961_v49  ;;  %v971_v49 = vld [vmem:[%s2229_s3 + $0x70] sm:$0xff]  ;;  %v972_v50 = vld [vmem:[%s2229_s3 + $0x78] sm:$0xff] }
 0x15f   :  { %899 = vmatprep.subr.bf16.mxu1 %v1582_v58  ;;  %v963_v58 = vld [vmem:[%s2229_s3 + $0x30] sm:$0xff] }
 0x160   :  { %v1441_v8 = vpack.c.bf16 %v964_v59, %v963_v58  ;;  %v538_v58 = vrot.slane %v529_v2, %v2017_v13  ;;  %v546_v59 = vrot.slane %v529_v2, %v545_v19 }
 0x162   :  { %900 = vmatpush1.bf16.msra.mxu1 %v1580_v60  ;;  %v1439_v60 = vpack.c.bf16 %v980_v6, %v979_v55  ;;  %v1489_v55 = vpack.c.bf16 %v1004_v54, %v1003_v53  ;;  %v541_v6 = vsub.s32 2, %v1652_v1 }
 0x163   :  { %901 = vmatprep.subr.bf16.mxu1 %v1588_v63  ;;  %v996_v63 = vld [vmem:[%s2229_s3 + $0x138] sm:$0xff] }
 0x166   :  { %902 = vmatpush1.bf16.msra.mxu1 %v1586_v62  ;;  %v995_v62 = vld [vmem:[%s2229_s3 + $0x130] sm:$0xff] }
 0x167   :  { %1428 = vmatprep.subr.bf16.mxu1 %v1427_v9  ;;  %v1473_v9 = vpack.c.bf16 %v996_v63, %v995_v62 }
 0x1fc   :  { %v429_v14 = vpop.f32.mrb[0].mxu1 }
 0x1fd   :  { %v437_v15 = vrot.slane %v429_v14, %v2014_v12  ;;  %v450_v16 = vrot.slane %v429_v14, %v2017_v13  ;;  %v431_v17 = vpop.f32.mrb[1].mxu1  ;;  %v1443_v14 = vpack.c.bf16 %v982_v3, %v981_v0 }
 0x1fe   :  { %v441_v18 = vrot.slane %v431_v17, %v2014_v12  ;;  %v454_v20 = vrot.slane %v431_v17, %v2017_v13  ;;  %v998_v17 = vld [vmem:[%s2229_s3 + $0x148] sm:$0xff] }
 0x200   :  { %v444_v21 = vcombine.low %v437_v15, %v441_v18  ;;  %v457_v22 = vcombine.low %v450_v16, %v454_v20  ;;  %v1475_v15 = vpack.c.bf16 %v1014_v7, %v1013_v4  ;;  %v997_v16 = vld [vmem:[%s2229_s3 + $0x140] sm:$0xff]  ;;  %v983_v18 = vld [vmem:[%s2229_s3 + $0xd0] sm:$0xff]  ;;  %v984_v20 = vld [vmem:[%s2229_s3 + $0xd8] sm:$0xff] }
 0x201   :  { %v1447_v27 = vpack.c.bf16 %v984_v20, %v983_v18 }
 0x202   :  { %v446_v23 = vsub.f32 %v1702_v37, %v444_v21  ;;  %v975_v37 = vld [vmem:[%s2229_s3 + $0x90] sm:$0xff] }
 0x203   :  { %v1431_v40 = vpack.c.bf16 %v976_v30, %v975_v37  ;;  %v1015_v21 = vld [vmem:[%s2229_s3 + $0x1d0] sm:$0xff]  ;;  %v985_v30 = vld [vmem:[%s2229_s3 + $0xe0] sm:$0xff] }
 0x204   :  { %v459_v24 = vmul.f32 %v457_v22, %v446_v23  ;;  %v1016_v22 = vld [vmem:[%s2229_s3 + $0x1d8] sm:$0xff]  ;;  %v1445_v23 = vpack.c.bf16 %v966_v11, %v965_v10  ;;  %v999_v37 = vld [vmem:[%s2229_s3 + $0x150] sm:$0xff]  ;;  %v1451_v36 = vpack.c.bf16 %v986_v31, %v985_v30 }
 0x205   :  { %v1479_v28 = vpack.c.bf16 %v1016_v22, %v1015_v21 }
 0x206   :  { %v461_v29 = vcombine.high %v459_v24, %v459_v24  ;;  %v463_v39 = vpack.c.bf16 %v459_v24, %v459_v24  ;;  %v1477_v24 = vpack.c.bf16 %v998_v17, %v997_v16  ;;  %v1285_v17 = vld [vmem:[%s2230_s4] ss:$0 sm:$0xff] }
 0x208   :  { %v464_v33 = vpack.c.bf16 %v461_v29, %v461_v29  ;;  %v1000_v29 = vld [vmem:[%s2229_s3 + $0x158] sm:$0xff] }
 0x20a   :  { %903 = vmatprep.mubr.bf16.mxu1 %v464_v33  ;;  %944 = vmatprep.mubr.bf16.mxu0 %v464_v33  ;;  %v1018_v33 = vld [vmem:[%s2229_s3 + $0x1e8] sm:$0xff] }
 0x20b   :  { %904 = vmatmul.mubr.bf16.vlgmr.msra.gmra.mrb[4].mxu1 %v463_v39  ;;  %945 = vmatmul.mubr.bf16.vlgmr.msra.gmra.mrb[4].mxu0 %v463_v39  ;;  %v1483_v38 = vpack.c.bf16 %v1018_v33, %v1017_v32  ;;  %v969_v39 = vld [vmem:[%s2229_s3 + $0x60] sm:$0xff] }
 0x20c   :  { %1430 = vmatpush3.bf16.msra.mxu1 %v1429_v34  ;;  %1462 = vmatpush3.bf16.msra.mxu0 %v1461_v35  ;;  %v1449_v34 = vpack.c.bf16 %v968_v26, %v967_v25  ;;  %v1481_v35 = vpack.c.bf16 %v1000_v29, %v999_v37 }
 0x20d   :  { %1432 = vmatprep.subr.bf16.mxu1 %v1431_v40  ;;  %1464 = vmatprep.subr.bf16.mxu0 %v1463_v41  ;;  %v970_v40 = vld [vmem:[%s2229_s3 + $0x68] sm:$0xff]  ;;  %v1001_v41 = vld [vmem:[%s2229_s3 + $0x160] sm:$0xff] }
 0x20e   :  { %v1453_v42 = vpack.c.bf16 %v970_v40, %v969_v39  ;;  %v1485_v44 = vpack.c.bf16 %v1002_v43, %v1001_v41 }
 0x210   :  { %1434 = vmatpush3.bf16.msra.mxu1 %v1433_v5  ;;  %1466 = vmatpush3.bf16.msra.mxu0 %v1465_v48  ;;  %v1455_v5 = vpack.c.bf16 %v988_v46, %v987_v45  ;;  %v1020_v48 = vld [vmem:[%s2229_s3 + $0x1f8] sm:$0xff] }
 0x211   :  { %1436 = vmatprep.subr.bf16.mxu1 %v1435_v51  ;;  %1468 = vmatprep.subr.bf16.mxu0 %v1467_v52  ;;  %v1487_v51 = vpack.c.bf16 %v1020_v48, %v1019_v47  ;;  %v1457_v52 = vpack.c.bf16 %v972_v50, %v971_v49 }
 0x214   :  { %1438 = vmatpush3.bf16.msra.mxu1 %v1437_v56  ;;  %1470 = vmatpush3.bf16.msra.mxu0 %v1469_v57  ;;  %v534_v56 = vrot.slane %v529_v2, %v2014_v12  ;;  %v542_v57 = vrot.slane %v529_v2, %v541_v6 }
 0x215   :  { %1440 = vmatprep.subr.bf16.mxu1 %v1439_v60  ;;  %1472 = vmatprep.subr.bf16.mxu0 %v1471_v61 }
 0x218   :  { %1442 = vmatpush3.bf16.msra.mxu1 %v1441_v8  ;;  %1474 = vmatpush3.bf16.msra.mxu0 %v1473_v9 }
 0x219   :  { %1444 = vmatprep.subr.bf16.mxu1 %v1443_v14  ;;  %1476 = vmatprep.subr.bf16.mxu0 %v1475_v15 }
 0x21c   :  { %1446 = vmatpush3.bf16.msra.mxu1 %v1445_v23  ;;  %1478 = vmatpush3.bf16.msra.mxu0 %v1477_v24 }
 0x21d   :  { %1448 = vmatprep.subr.bf16.mxu1 %v1447_v27  ;;  %1480 = vmatprep.subr.bf16.mxu0 %v1479_v28 }
 0x220   :  { %1450 = vmatpush3.bf16.msra.mxu1 %v1449_v34  ;;  %1482 = vmatpush3.bf16.msra.mxu0 %v1481_v35 }
 0x221   :  { %1452 = vmatprep.subr.bf16.mxu1 %v1451_v36  ;;  %1484 = vmatprep.subr.bf16.mxu0 %v1483_v38 }
 0x224   :  { %1454 = vmatpush3.bf16.msra.mxu1 %v1453_v42  ;;  %1486 = vmatpush3.bf16.msra.mxu0 %v1485_v44 }
 0x225   :  { %1456 = vmatprep.subr.bf16.mxu1 %v1455_v5  ;;  %1488 = vmatprep.subr.bf16.mxu0 %v1487_v51 }
 0x228   :  { %1458 = vmatpush3.bf16.msra.mxu1 %v1457_v52  ;;  %1490 = vmatpush3.bf16.msra.mxu0 %v1489_v55 }
 0x2de   :  { %v905_v60 = vpop.f32.mrb[4].mxu1  ;;  %v946_v61 = vpop.f32.mrb[4].mxu0 }
 0x2df   :  { %v906_v62 = vadd.f32 %v905_v60, %v534_v56  ;;  %v947_v63 = vadd.f32 %v946_v61, %v542_v57  ;;  %v907_v0 = vpop.f32.mrb[5].mxu1  ;;  %v948_v3 = vpop.f32.mrb[5].mxu0 }
 0x2e0   :  { %v908_v4 = vadd.f32 %v907_v0, %v538_v58  ;;  %v949_v7 = vadd.f32 %v948_v3, %v546_v59  ;;  %v909_v8 = vpop.f32.mrb[6].mxu1  ;;  %v950_v9 = vpop.f32.mrb[6].mxu0 }
 0x2e1   :  { %v910_v10 = vpop.f32.mrb[7].mxu1  ;;  %v951_v11 = vpop.f32.mrb[7].mxu0  ;;  %v953_v15 = vmax.f32 %v906_v62, 0.0  ;;  %v955_v12 = vmax.f32 %v947_v63, 0.0 }
 0x2e2   :  { %v954_v14 = vmax.f32 %v908_v4, 0.0  ;;  %v956_v1 = vmax.f32 %v949_v7, 0.0 }
 0x2e4   :  { %1092 = vmatprep.mubr.f32.mxu1 %v954_v14  ;;  %1162 = vmatprep.mubr.f32.mxu0 %v956_v1 }
 0x2e5   :  { %1093 = vmatmul.mubr.f32.vlgmr.msra.gmra.mrb[2].mxu1 %v953_v15  ;;  %1163 = vmatmul.mubr.f32.vlgmr.msra.gmra.mrb[2].mxu0 %v955_v12 }
 0x3b8   :  { %v1353_v13 = vpop.f32.mrb[2].mxu1  ;;  %v1388_v16 = vpop.f32.mrb[2].mxu0 }
 0x3b9   :  { %v1354_v18 = vpop.f32.mrb[3].mxu1  ;;  %v1389_v20 = vpop.f32.mrb[3].mxu0 }
 0x3ba   :  { %v1355_v21 = vadd.f32 %v1354_v18, %v1353_v13  ;;  %v1390_v22 = vadd.f32 %v1389_v20, %v1388_v16 }
 0x3bc   :  { %v1095_v23 = vadd.f32 %v1355_v21, %v1285_v17 }
 0x3be   :  { %v1165_v24 = vadd.f32 %v1390_v22, %v1095_v23 }
 0x3c0   :  { %1169 = vst.msk [vmem:[#allocation2] sm:$0xf] %vm1168_vm0, %v1165_v24 }
 0x3c1   :  { %1605 = shalt.err (!%p1602_p4)
}
 0x3c2   :  { %s1606_s17 = scalar_lea.hbm %s2231_s5, 64 }
 0x3c3   :  { %p1607_p5 = scmp.ne.s32.totalorder %s2231_s5, %s1606_s17  ;;  %p1610_p6 = scmp.lt.u32.totalorder %s1606_s17, %s2231_s5 }
 0x3c5   :  { %p1612_p7 = pnand %p1610_p6, %p1607_p5 }
 0x3c7   :  { %1615 = shalt.err (!%p1612_p7)
}
 0x3c8   :  { %1179 = dma.vmem_to_hbm [thread:$0]  %s1177_s14, 64, %s2231_s5, [#allocation3]  }
 0x3c9   :  { %1616 = dma.done.wait [#allocation3], 64  }
 0x3ca   :  { %1617 = vsyncadd [#allocation3], 4294967232 }
 0x3cb   :  { %1183 = vsyncpa [#allocation3], 1 }

</bundles_post_ra>
